<compile_context>
chip_gen: v6e
topology: v6e:2x2x1
jax: 0.10.0
libtpu: 0.0.40
codegen_flags: <defaults>
</compile_context>

<pallas_src>
import math
import numpy as np
import jax
import jax.numpy as jnp
from jax.experimental import pallas as pl
from jax.experimental.pallas import tpu as pltpu

# ----------------------- audio config (synthetic) ---------------------------
SAMPLE_RATE = 16000
WINDOW_SIZE_S = 0.008      # -> 128 samples (power of 2, so n_fft == win_length)
WINDOW_STRIDE_S = 0.004    # -> 64 samples hop
N_MELS = 64

WIN_LENGTH = int(SAMPLE_RATE * WINDOW_SIZE_S)          # 128
HOP_LENGTH = int(SAMPLE_RATE * WINDOW_STRIDE_S)        # 64
N_FFT = 2 ** math.ceil(math.log2(WIN_LENGTH))          # 128
N_FREQ = N_FFT // 2 + 1                                # 65
NF_PAD = 128                                           # freq axis padded to lane width
LOG_ZERO_GUARD = 2.0 ** (-24)
EPSILON = 1e-5

# bf16 MXU inputs (accumulation stays f32).  Set to jnp.float32 to reproduce
# the PyTorch reference bit-tightly at ~3-6x lower MXU throughput on v6e/v7x.
MATMUL_DTYPE = jnp.bfloat16

VMEM_BLOCK_BUDGET = 20 * 1024 * 1024      # target per-grid-step block footprint
VMEM_LIMIT_BYTES = 48 * 1024 * 1024       # < v7x 64 MiB physical, > all defaults


# -------------------------- parameter construction --------------------------
def hann_window_periodic(n):
    k = np.arange(n, dtype=np.float64)
    return 0.5 - 0.5 * np.cos(2.0 * np.pi * k / n)


def dft_basis_windowed(n_fft, win_length):
    """Real/imag one-sided DFT basis with the Hann window folded in: (n_fft, n_freq)."""
    window = np.zeros(n_fft, dtype=np.float64)
    pad = (n_fft - win_length) // 2
    window[pad:pad + win_length] = hann_window_periodic(win_length)
    n = np.arange(n_fft, dtype=np.float64)[:, None]
    k = np.arange(n_fft // 2 + 1, dtype=np.float64)[None, :]
    ang = 2.0 * np.pi * n * k / n_fft
    wr = window[:, None] * np.cos(ang)
    wi = -window[:, None] * np.sin(ang)
    return wr.astype(np.float32), wi.astype(np.float32)


def melscale_fbanks(n_freqs, f_min, f_max, n_mels, sample_rate):
    """HTK mel filterbank, norm=None (torchaudio defaults). Shape (n_freqs, n_mels)."""
    all_freqs = np.linspace(0.0, sample_rate / 2.0, n_freqs)

    def hz_to_mel(f):
        return 2595.0 * np.log10(1.0 + f / 700.0)

    def mel_to_hz(m):
        return 700.0 * (10.0 ** (m / 2595.0) - 1.0)

    m_pts = np.linspace(hz_to_mel(f_min), hz_to_mel(f_max), n_mels + 2)
    f_pts = mel_to_hz(m_pts)
    f_diff = f_pts[1:] - f_pts[:-1]                       # (n_mels+1,)
    slopes = f_pts[None, :] - all_freqs[:, None]          # (n_freqs, n_mels+2)
    down = -slopes[:, :-2] / f_diff[:-1]
    up = slopes[:, 2:] / f_diff[1:]
    fb = np.maximum(0.0, np.minimum(down, up))
    return fb.astype(np.float32)


def _build_bases():
    """Returns fused W (N_FFT, 2*NF_PAD) = [re | im] and mel (NF_PAD, N_MELS).

    Frequency axis zero-padded 65 -> 128 so every matmul dim is (8,128)-aligned;
    padded frequencies contribute exactly zero."""
    wr, wi = dft_basis_windowed(N_FFT, WIN_LENGTH)            # (128, 65) each
    wr_p = np.zeros((N_FFT, NF_PAD), np.float32)
    wi_p = np.zeros((N_FFT, NF_PAD), np.float32)
    wr_p[:, :N_FREQ] = wr
    wi_p[:, :N_FREQ] = wi
    w_all = np.concatenate([wr_p, wi_p], axis=1)              # (128, 256)

    mel = melscale_fbanks(N_FREQ, 0.0, SAMPLE_RATE / 2.0, N_MELS, SAMPLE_RATE)
    mel_p = np.zeros((NF_PAD, N_MELS), np.float32)
    mel_p[:N_FREQ] = mel                                      # zero rows for padded freqs
    return w_all, mel_p


# ------------------------------- Pallas kernel -------------------------------
def mel_spec_kernel(hops_ref, w_ref, mel_ref, out_ref):
    # hops_ref : (bb, n_frames+1, HOP)  hop-sized chunks of the reflect-padded signal
    # w_ref    : (N_FFT, 2*NF_PAD)      fused windowed DFT basis [re | im]
    # mel_ref  : (NF_PAD, N_MELS)
    # out_ref  : (bb, N_MELS, padded_frames)  (time axis lane-padded to %128)
    bb, n_hops, hop = hops_ref.shape
    n_frames = n_hops - 1
    pad_t = out_ref.shape[2] - n_frames

    # Lane-dense frame LHS: frame i = concat(hops[i], hops[i+1])  (2*HOP == N_FFT).
    cur = hops_ref[:, pl.ds(0, n_frames), :]                   # (bb, F, 64)
    nxt = hops_ref[:, pl.ds(1, n_frames), :]                   # (bb, F, 64)
    frames = jnp.concatenate([cur, nxt], axis=-1)              # (bb, F, 128)
    frames = frames.reshape(bb * n_frames, 2 * hop).astype(w_ref.dtype)

    # One fused K=128 DFT matmul -> [re | im], f32 accumulation.
    reim = jnp.dot(frames, w_ref[...], preferred_element_type=jnp.float32)  # (M, 256)
    re = reim[:, :NF_PAD]
    im = reim[:, NF_PAD:]
    power = re * re + im * im                                  # (M, 128)

    # Mel projection + log compression.  log1p(x + g) == log(1 + g + x); plain
    # log keeps the transcendental on the EUP with guaranteed Mosaic support.
    spec = jnp.dot(power.astype(mel_ref.dtype), mel_ref[...],
                   preferred_element_type=jnp.float32)         # (M, N_MELS)
    spec = jnp.log(spec + (1.0 + LOG_ZERO_GUARD))
    spec = spec.reshape(bb, n_frames, N_MELS)

    # Per-(batch, mel-bin) normalization over time.  Two-pass mean/var
    # (cancellation-safe), computed in frames-major layout before the transpose.
    # Matches torch: mean over time, unbiased std, std += eps (n_frames==1 guarded).
    inv_n = 1.0 / n_frames
    inv_nm1 = 1.0 / max(n_frames - 1, 1)
    mean = jnp.sum(spec, axis=1, keepdims=True) * inv_n        # (bb, 1, N_MELS)
    centered = spec - mean
    var = jnp.sum(centered * centered, axis=1, keepdims=True) * inv_nm1
    std = jnp.sqrt(var) + EPSILON
    normalized = centered * pl.reciprocal(std, approx=True)    # divide -> EUP

    # Pad the time axis to the lane-dense output extent, then one transpose.
    if pad_t > 0:
        normalized = jnp.concatenate(
            [normalized, jnp.zeros((bb, pad_t, N_MELS), normalized.dtype)], axis=1)
    out_ref[...] = jnp.transpose(normalized, (0, 2, 1))        # (bb, N_MELS, padded_F)


# --------------------------------- wrapper -----------------------------------
def _choose_block_b(batch, n_frames, padded_frames):
    """Largest divisor of batch whose per-step VMEM block footprint fits the
    budget; only split into 2 grid steps (v7x dual TC) if the MXU stays fed."""
    n_hops = n_frames + 1
    per_row = (
        2 * n_hops * HOP_LENGTH * 4          # hops input block, double-buffered
        + n_frames * N_FFT * 4               # lane-dense frame LHS
        + n_frames * 2 * NF_PAD * 4          # reim
        + n_frames * NF_PAD * 4              # power
        + 3 * n_frames * N_MELS * 4          # spec / centered / normalized temps
        + 2 * N_MELS * padded_frames * 4     # output block, double-buffered
    )
    bb = max(1, min(batch, VMEM_BLOCK_BUDGET // per_row))
    while batch % bb:
        bb -= 1
    if batch // bb == 1 and bb % 2 == 0 and (bb // 2) * n_frames >= 512:
        bb //= 2                             # 2 grid steps for v7x's 2 TensorCores
    return bb


def spectrogram_extractor(signal, input_lengths=None):
    """signal: (B, T) float32.  Returns (spect (B, n_mels, n_frames), lengths)."""
    B, T = signal.shape
    pad = N_FFT // 2
    n_frames = 1 + T // HOP_LENGTH
    n_hops = n_frames + 1
    pad_t = (-n_frames) % 128
    padded_frames = n_frames + pad_t

    # Glue: reflect-pad (center=True); every frame lives within the first
    # n_hops*HOP samples of the padded signal, reshaped to hop-sized rows.
    padded = jnp.pad(signal.astype(jnp.float32), ((0, 0), (pad, pad)), mode="reflect")
    hops = padded[:, : n_hops * HOP_LENGTH].reshape(B, n_hops, HOP_LENGTH)

    w_np, mel_np = _build_bases()
    w = jnp.asarray(w_np, dtype=MATMUL_DTYPE)
    mel_fb = jnp.asarray(mel_np, dtype=MATMUL_DTYPE)

    bb = _choose_block_b(B, n_frames, padded_frames)
    grid = (B // bb,)

    spect_padded = pl.pallas_call(
        mel_spec_kernel,
        out_shape=jax.ShapeDtypeStruct((B, N_MELS, padded_frames), jnp.float32),
        grid_spec=pltpu.PrefetchScalarGridSpec(
            num_scalar_prefetch=0,
            grid=grid,
            in_specs=[
                pl.BlockSpec((bb, n_hops, HOP_LENGTH), lambda b: (b, 0, 0)),
                pl.BlockSpec((N_FFT, 2 * NF_PAD), lambda b: (0, 0)),
                pl.BlockSpec((NF_PAD, N_MELS), lambda b: (0, 0)),
            ],
            out_specs=pl.BlockSpec((bb, N_MELS, padded_frames), lambda b: (b, 0, 0)),
        ),
        compiler_params=pltpu.CompilerParams(
            dimension_semantics=("parallel",),
            vmem_limit_bytes=VMEM_LIMIT_BYTES,
        ),
    )(hops, w, mel_fb)

    spect = spect_padded[:, :, :n_frames] if pad_t else spect_padded

    if input_lengths is not None:
        lengths = jnp.ceil(
            (input_lengths.astype(jnp.float32) - WIN_LENGTH + HOP_LENGTH) / HOP_LENGTH
        ).astype(jnp.int32)
    else:
        lengths = None
    return spect, lengths


if __name__ == "__main__":
    key = jax.random.PRNGKey(0)
    B, T = 2, 1024
    signal = jax.random.normal(key, (B, T), dtype=jnp.float32)
    input_lengths = jnp.array([1024, 800], dtype=jnp.int32)

    spect, lengths = spectrogram_extractor(signal, input_lengths)
    jax.block_until_ready(spect)
    jax.block_until_ready(lengths)

    n_frames = 1 + T // HOP_LENGTH
    assert spect.shape == (B, N_MELS, n_frames)
    assert spect.dtype == jnp.float32
    assert lengths.shape == (B,) and lengths.dtype == jnp.int32
    assert bool(jnp.all(jnp.isfinite(spect)))
    print("KERNEL_OK")
</pallas_src>

<mosaic_0001>
module attributes {stable_mosaic.version = 11 : i64} {
  func.func @mel_spec_kernel(%arg0: i32, %arg1: memref<2x18x64xf32, #tpu.memory_space<vmem>>, %arg2: memref<128x256xbf16, #tpu.memory_space<vmem>>, %arg3: memref<128x64xbf16, #tpu.memory_space<vmem>>, %arg4: memref<2x64x128xf32, #tpu.memory_space<vmem>>) attributes {dimension_semantics = [#tpu.dimension_semantics<parallel>], iteration_bounds = array<i64: 1>, scalar_prefetch = 0 : i64, scratch_operands = 0 : i64, tpu.core_type = #tpu.core_type<tc>, window_params = [{transform_indices = @transform_0, window_bounds = array<i64: 2, 18, 64>}, {pipeline_mode = #tpu.pipeline_mode<synchronous>, transform_indices = @transform_1, window_bounds = array<i64: 128, 256>}, {pipeline_mode = #tpu.pipeline_mode<synchronous>, transform_indices = @transform_2, window_bounds = array<i64: 128, 64>}, {transform_indices = @transform_3, window_bounds = array<i64: 2, 64, 128>}]} {
    %c0 = arith.constant 0 : index
    %c0_0 = arith.constant 0 : index
    %c0_1 = arith.constant 0 : index
    %0 = vector.load %arg1[%c0, %c0_0, %c0_1] : memref<2x18x64xf32, #tpu.memory_space<vmem>>, vector<2x17x64xf32>
    %c0_2 = arith.constant 0 : index
    %c1 = arith.constant 1 : index
    %c0_3 = arith.constant 0 : index
    %1 = vector.load %arg1[%c0_2, %c1, %c0_3] : memref<2x18x64xf32, #tpu.memory_space<vmem>>, vector<2x17x64xf32>
    %2 = tpu.concatenate %0, %1 in 2 : vector<2x17x64xf32>, vector<2x17x64xf32> -> vector<2x17x128xf32>
    %3 = vector.shape_cast %2 : vector<2x17x128xf32> to vector<34x128xf32>
    %4 = arith.truncf %3 : vector<34x128xf32> to vector<34x128xbf16>
    %c0_4 = arith.constant 0 : index
    %c0_5 = arith.constant 0 : index
    %5 = vector.load %arg2[%c0_4, %c0_5] : memref<128x256xbf16, #tpu.memory_space<vmem>>, vector<128x256xbf16>
    %cst = arith.constant dense<0.000000e+00> : vector<34x256xf32>
    %6 = tpu.matmul %4, %5, %cst {dimension_numbers = #tpu.dot_dimension_numbers<[1], [0], [0], [1], [0, 0, 1, 1], [], []>} : vector<34x128xbf16>, vector<128x256xbf16>, vector<34x256xf32> -> vector<34x256xf32>
    %7 = vector.extract_strided_slice %6 {offsets = [0, 0], sizes = [34, 128], strides = [1, 1]} : vector<34x256xf32> to vector<34x128xf32>
    %8 = vector.extract_strided_slice %6 {offsets = [0, 128], sizes = [34, 128], strides = [1, 1]} : vector<34x256xf32> to vector<34x128xf32>
    %9 = arith.mulf %7, %7 : vector<34x128xf32>
    %10 = arith.mulf %8, %8 : vector<34x128xf32>
    %11 = arith.addf %9, %10 : vector<34x128xf32>
    %12 = arith.truncf %11 : vector<34x128xf32> to vector<34x128xbf16>
    %c0_6 = arith.constant 0 : index
    %c0_7 = arith.constant 0 : index
    %13 = vector.load %arg3[%c0_6, %c0_7] : memref<128x64xbf16, #tpu.memory_space<vmem>>, vector<128x64xbf16>
    %cst_8 = arith.constant dense<0.000000e+00> : vector<34x64xf32>
    %14 = tpu.matmul %12, %13, %cst_8 {dimension_numbers = #tpu.dot_dimension_numbers<[1], [0], [0], [1], [0, 0, 1, 1], [], []>} : vector<34x128xbf16>, vector<128x64xbf16>, vector<34x64xf32> -> vector<34x64xf32>
    %cst_9 = arith.constant 1.000000e+00 : f32
    %15 = vector.broadcast %cst_9 : f32 to vector<34x64xf32>
    %16 = arith.addf %14, %15 : vector<34x64xf32>
    %17 = math.log %16 : vector<34x64xf32>
    %18 = vector.shape_cast %17 : vector<34x64xf32> to vector<2x17x64xf32>
    %cst_10 = arith.constant dense<0.000000e+00> : vector<2x64xf32>
    %19 = vector.multi_reduction <add>, %18, %cst_10 [1] : vector<2x17x64xf32> to vector<2x64xf32>
    %20 = vector.shape_cast %19 : vector<2x64xf32> to vector<2x1x64xf32>
    %cst_11 = arith.constant 0.0588235296 : f32
    %21 = vector.broadcast %cst_11 : f32 to vector<2x1x64xf32>
    %22 = arith.mulf %20, %21 : vector<2x1x64xf32>
    %23 = vector.broadcast %22 : vector<2x1x64xf32> to vector<2x17x64xf32>
    %24 = arith.subf %18, %23 : vector<2x17x64xf32>
    %25 = arith.mulf %24, %24 : vector<2x17x64xf32>
    %cst_12 = arith.constant dense<0.000000e+00> : vector<2x64xf32>
    %26 = vector.multi_reduction <add>, %25, %cst_12 [1] : vector<2x17x64xf32> to vector<2x64xf32>
    %27 = vector.shape_cast %26 : vector<2x64xf32> to vector<2x1x64xf32>
    %cst_13 = arith.constant 6.250000e-02 : f32
    %28 = vector.broadcast %cst_13 : f32 to vector<2x1x64xf32>
    %29 = arith.mulf %27, %28 : vector<2x1x64xf32>
    %30 = math.sqrt %29 : vector<2x1x64xf32>
    %cst_14 = arith.constant 9.99999974E-6 : f32
    %31 = vector.broadcast %cst_14 : f32 to vector<2x1x64xf32>
    %32 = arith.addf %30, %31 : vector<2x1x64xf32>
    %33 = tpu.reciprocal %32 {approx = true} : vector<2x1x64xf32> -> vector<2x1x64xf32>
    %34 = vector.broadcast %33 : vector<2x1x64xf32> to vector<2x17x64xf32>
    %35 = arith.mulf %24, %34 : vector<2x17x64xf32>
    %cst_15 = arith.constant 0.000000e+00 : f32
    %36 = vector.broadcast %cst_15 : f32 to vector<2x111x64xf32>
    %37 = tpu.concatenate %35, %36 in 1 : vector<2x17x64xf32>, vector<2x111x64xf32> -> vector<2x128x64xf32>
    %38 = tpu.transpose %37, [0, 2, 1] : vector<2x128x64xf32> -> vector<2x64x128xf32>
    %c0_16 = arith.constant 0 : index
    %c0_17 = arith.constant 0 : index
    %c0_18 = arith.constant 0 : index
    %39 = vector.load %arg4[%c0_16, %c0_17, %c0_18] : memref<2x64x128xf32, #tpu.memory_space<vmem>>, vector<2x64x128xf32>
    tpu.vector_store %arg4[%c0_16, %c0_17, %c0_18], %38 {strides = array<i32>} : memref<2x64x128xf32, #tpu.memory_space<vmem>>, vector<2x64x128xf32>,
    return
  }
  func.func @transform_0(%arg0: i32) -> (i32, i32, i32) {
    %c0_i32 = arith.constant 0 : i32
    %c0_i32_0 = arith.constant 0 : i32
    %c0_i32_1 = arith.constant 0 : i32
    return %arg0, %c0_i32, %c0_i32_0 : i32, i32, i32
  }
  func.func @transform_1(%arg0: i32) -> (i32, i32) {
    %c0_i32 = arith.constant 0 : i32
    %c0_i32_0 = arith.constant 0 : i32
    %c0_i32_1 = arith.constant 0 : i32
    return %c0_i32, %c0_i32_0 : i32, i32
  }
  func.func @transform_2(%arg0: i32) -> (i32, i32) {
    %c0_i32 = arith.constant 0 : i32
    %c0_i32_0 = arith.constant 0 : i32
    %c0_i32_1 = arith.constant 0 : i32
    return %c0_i32, %c0_i32_0 : i32, i32
  }
  func.func @transform_3(%arg0: i32) -> (i32, i32, i32) {
    %c0_i32 = arith.constant 0 : i32
    %c0_i32_0 = arith.constant 0 : i32
    %c0_i32_1 = arith.constant 0 : i32
    return %arg0, %c0_i32, %c0_i32_0 : i32, i32, i32
  }
}

</mosaic_0001>

<bundles_post_ra>
// kernel: tpu_custom_call.1
= control target key start
LH: loop header
LB: loop body
LE: loop exit
PB: predicated region body
PF: predicated region fallthrough
CT: control target
= control target key end

     0   :  { %s2479_s16 = smov 64   ;;  %v2480_v13 = vmov 0   ;;  %s3268_s0 = inlined_call_operand.vmem [shape: f32[2,18,64], index: 0, kind: input, shape index: {}]   ;;  %s3269_s1 = inlined_call_operand.vmem [shape: bf16[128,256], index: 1, kind: input, shape index: {}]   ;;  %s3270_s2 = inlined_call_operand.vmem [shape: bf16[128,64], index: 2, kind: input, shape index: {}]   ;;  %s3271_s3 = inlined_call_operand.hbm [shape: f32[2,64,128], index: 3, kind: output, shape index: {}]  }
   0x1   :  { %v25_v0 = vld [vmem:[%s3268_s0 + $0x19] sm:$0xff]  ;;  %v22_v1 = vld [vmem:[%s3268_s0 + $0x1] sm:$0xff]  ;;  %v23_v3 = vld [vmem:[%s3268_s0 + $0x9] sm:$0xff]  ;;  %636 = vmatprep.mubr.bf16.mxu0 %v2480_v13 }
   0x2   :  { %40 = vrot.lane.b32.xlu1 %v25_v0, %s2479_s16  ;;  %34 = vrot.lane.b32.xlu0 %v22_v1, %s2479_s16  ;;  %v26_v2 = vld [vmem:[%s3268_s0 + $0x21] sm:$0xff]  ;;  %v2407_v4 = vld [vmem:[%s3269_s1 + $0x74] ss:$8 sps:$4 sm:$0xff]  }
   0x3   :  { %v2409_v5 = vld [vmem:[%s3269_s1 + $0x70] ss:$8 sps:$4 sm:$0xff]   ;;  %v2410_v6 = vld [vmem:[%s3269_s1 + $0x64] ss:$8 sps:$4 sm:$0xff]   ;;  %v27_v8 = vld [vmem:[%s3268_s0 + $0x29] sm:$0x1]  ;;  %604 = vmatprep.subr.bf16.mxu0 %v2407_v4 }
   0x4   :  { %v24_v7 = vld [vmem:[%s3268_s0 + $0x11] sm:$0x1]  ;;  %605 = vmatpush1.bf16.msra.mxu0 %v2409_v5  ;;  %v2412_v9 = vld [vmem:[%s3269_s1 + $0x60] ss:$8 sps:$4 sm:$0xff]   ;;  %v2413_v10 = vld [vmem:[%s3269_s1 + $0x54] ss:$8 sps:$4 sm:$0xff]  }
   0x5   :  { %606 = vmatprep.subr.bf16.mxu0 %v2410_v6  ;;  %v2415_v11 = vld [vmem:[%s3269_s1 + $0x50] ss:$8 sps:$4 sm:$0xff]   ;;  %v2416_v12 = vld [vmem:[%s3269_s1 + $0x44] ss:$8 sps:$4 sm:$0xff]   ;;  %v2418_v14 = vld [vmem:[%s3269_s1 + $0x40] ss:$8 sps:$4 sm:$0xff]  }
   0x6   :  { %42 = vrot.lane.b32.xlu1 %v26_v2, %s2479_s16  ;;  %36 = vrot.lane.b32.xlu0 %v23_v3, %s2479_s16  ;;  %v2419_v15 = vld [vmem:[%s3269_s1 + $0x34] ss:$8 sps:$4 sm:$0xff]   ;;  %v2421_v16 = vld [vmem:[%s3269_s1 + $0x30] ss:$8 sps:$4 sm:$0xff]  }
   0x7   :  { %v2422_v17 = vld [vmem:[%s3269_s1 + $0x24] ss:$8 sps:$4 sm:$0xff]  }
   0x8   :  { %607 = vmatpush1.bf16.msra.mxu0 %v2412_v9 }
   0x9   :  { %608 = vmatprep.subr.bf16.mxu0 %v2413_v10 }
   0xa   :  { %38 = vrot.lane.b32.xlu0 %v24_v7, %s2479_s16  ;;  %44 = vrot.lane.b32.xlu1 %v27_v8, %s2479_s16 }
   0xc   :  { %609 = vmatpush1.bf16.msra.mxu0 %v2415_v11 }
   0xd   :  { %610 = vmatprep.subr.bf16.mxu0 %v2416_v12 }
  0x10   :  { %611 = vmatpush1.bf16.msra.mxu0 %v2418_v14 }
  0x11   :  { %612 = vmatprep.subr.bf16.mxu0 %v2419_v15 }
  0x12   :  { %8 = vsyncpa [#allocation3], 0  ;;  %v2424_v18 = vld [vmem:[%s3269_s1 + $0x20] ss:$8 sps:$4 sm:$0xff]   ;;  %v2425_v19 = vld [vmem:[%s3269_s1 + $0x14] ss:$8 sps:$4 sm:$0xff]   ;;  %v69_v31 = vlaneseq }
  0x13   :  { %v2427_v20 = vld [vmem:[%s3269_s1 + $0x10] ss:$8 sps:$4 sm:$0xff]   ;;  %v2428_v21 = vld [vmem:[%s3269_s1 + $0x4] ss:$8 sps:$4 sm:$0xff]   ;;  %v2430_v22 = vld [vmem:[%s3269_s1] ss:$8 sps:$4 sm:$0xff]  }
  0x14   :  { %613 = vmatpush1.bf16.msra.mxu0 %v2421_v16  ;;  %v2431_v23 = vld [vmem:[%s3270_s2 + $0x38] sm:$0xff]   ;;  %v2481_v24 = vmov 0.0   ;;  %v2432_v25 = vld [vmem:[%s3270_s2 + $0x30] sm:$0xff]   ;;  %v2433_v26 = vld [vmem:[%s3270_s2 + $0x28] sm:$0xff]   ;;  %v2482_v29 = vmov 1966171168  }
  0x15   :  { %614 = vmatprep.subr.bf16.mxu0 %v2422_v17  ;;  %2371 = vmatprep.subr.bf16.mxu1 %v2481_v24  ;;  %v2434_v27 = vld [vmem:[%s3270_s2 + $0x20] sm:$0xff]   ;;  %v2435_v28 = vld [vmem:[%s3270_s2 + $0x18] sm:$0xff]   ;;  %v67_v30 = vunpack.c.l.s4 %v2482_v29  ;;  %v70_v33 = vshrl.u32 %v69_v31, 7  ;;  %vm52_vm0 = vcmask 523264   ;;  %v17_v62 = vld [vmem:[%s3268_s0 + $0x8] sm:$0xff]  ;;  %vm2483_vm1 = vmmov 0  }
  0x16   :  { %2372 = vmatpush3.bf16.msra.mxu1 %v2431_v23  ;;  %v19_v35 = vld [vmem:[%s3268_s0 + $0x18] sm:$0xff]  ;;  %v16_v36 = vld [vmem:[%s3268_s0] sm:$0xff]  ;;  %2387 = vmatprep.mubr.msk.bf16.mxu1 %vm2483_vm1, %v2481_v24  ;;  %vm1303_vm2 = vcmask 516096   ;;  %vm2229_vm7 = vcmask 1040384  }
  0x17   :  { %2373 = vmatprep.subr.bf16.mxu1 %v2481_v24  ;;  %v68_v32 = vunpack.c.0.s8 %v67_v30  ;;  %v20_v45 = vld [vmem:[%s3268_s0 + $0x20] sm:$0xff] }
  0x18   :  { %615 = vmatpush1.bf16.msra.mxu0 %v2424_v18 }
  0x19   :  { %616 = vmatprep.subr.bf16.mxu0 %v2425_v19  ;;  %v2595_v34 = vsub.s32 %v68_v32, %v70_v33  ;;  %v18_v32 = vld [vmem:[%s3268_s0 + $0x10] sm:$0x1] }
  0x1a   :  { %2374 = vmatpush3.bf16.msra.mxu1 %v2432_v25 }
  0x1b   :  { %2375 = vmatprep.subr.bf16.mxu1 %v2481_v24 }
  0x1c   :  { %617 = vmatpush1.bf16.msra.mxu0 %v2427_v20 }
  0x1d   :  { %618 = vmatprep.subr.bf16.mxu0 %v2428_v21 }
  0x1e   :  { %2376 = vmatpush3.bf16.msra.mxu1 %v2433_v26 }
  0x1f   :  { %2377 = vmatprep.subr.bf16.mxu1 %v2481_v24 }
  0x20   :  { %619 = vmatpush1.bf16.msra.mxu0 %v2430_v22 }
  0x22   :  { %2378 = vmatpush3.bf16.msra.mxu1 %v2434_v27 }
  0x23   :  { %2379 = vmatprep.subr.bf16.mxu1 %v2481_v24 }
  0x26   :  { %2380 = vmatpush3.bf16.msra.mxu1 %v2435_v28 }
  0x27   :  { %2381 = vmatprep.subr.bf16.mxu1 %v2481_v24 }
  0x74   :  { %v41_v37 = vpop.permute.xlu1 %40  ;;  %v35_v38 = vpop.permute.xlu0 %34 }
  0x75   :  { %v56_v39 = vsel %vm52_vm0, %v19_v35, %v41_v37  ;;  %v53_v40 = vsel %vm52_vm0, %v16_v36, %v35_v38 }
  0x76   :  { %v177_v41 = vcombine.high %v56_v39, %v56_v39  ;;  %v184_v42 = vrot.slane %v56_v39, %v2595_v34  ;;  %v65_v43 = vcombine.high %v53_v40, %v53_v40  ;;  %v72_v44 = vrot.slane %v53_v40, %v2595_v34 }
  0x78   :  { %v191_v46 = vrot.slane %v177_v41, %v2595_v34  ;;  %v192_v47 = vcombine.high %v184_v42, %v184_v42  ;;  %v2612_v48 = vrot.slane %v184_v42, %v2595_v34  ;;  %v79_v49 = vrot.slane %v65_v43, %v2595_v34  ;;  %v43_v50 = vpop.permute.xlu1 %42  ;;  %v37_v61 = vpop.permute.xlu0 %36 }
  0x79   :  { %v80_v51 = vcombine.high %v72_v44, %v72_v44  ;;  %v57_v52 = vsel %vm52_vm0, %v20_v45, %v43_v50  ;;  %v88_v58 = vrot.slane %v72_v44, %v2595_v34  ;;  %v54_v8 = vsel %vm52_vm0, %v17_v62, %v37_v61 }
  0x7a   :  { %v193_v53 = vcombine.high %v191_v46, %v191_v46  ;;  %v207_v54 = vrot.slane %v191_v46, %v2595_v34  ;;  %v214_v55 = vrot.slane %v192_v47, %v2595_v34  ;;  %v222_v56 = vcombine.high %v2612_v48, %v2612_v48 }
  0x7b   :  { %v81_v57 = vcombine.high %v79_v49, %v79_v49  ;;  %v95_v59 = vrot.slane %v79_v49, %v2595_v34  ;;  %v102_v60 = vrot.slane %v80_v51, %v2595_v34  ;;  %v226_v2 = vcombine.high %v57_v52, %v57_v52 }
  0x7c   :  { %v221_v63 = vrot.slane %v193_v53, %v2595_v34  ;;  %v223_v0 = vcombine.high %v207_v54, %v207_v54  ;;  %v224_v1 = vcombine.high %v214_v55, %v214_v55  ;;  %v233_v6 = vrot.slane %v57_v52, %v2595_v34  ;;  %v39_v31 = vpop.permute.xlu0 %38  ;;  %v45_v51 = vpop.permute.xlu1 %44  ;;  %v21_v52 = vld [vmem:[%s3268_s0 + $0x28] sm:$0x1] }
  0x7d   :  { %v109_v3 = vrot.slane %v81_v57, %v2595_v34  ;;  %v289_v4 = vcombine.low %v88_v58, %v102_v60  ;;  %v2328_v5 = vcombine.high %v88_v58, %v102_v60  ;;  %v2629_v7 = vcombine.low %v214_v55, %v222_v56 }
  0x7e   :  { %v2632_v9 = vcombine.low %v224_v1, %v207_v54  ;;  %v2634_v10 = vcombine.low %v221_v63, %v223_v0  ;;  %v225_v12 = vcombine.high %v221_v63, %v221_v63  ;;  %v240_v15 = vrot.slane %v226_v2, %v2595_v34 }
  0x7f   :  { %v291_v11 = vcombine.low %v95_v59, %v109_v3  ;;  %v2329_v14 = vcombine.high %v95_v59, %v109_v3  ;;  %v241_v16 = vcombine.high %v233_v6, %v233_v6  ;;  %v249_v17 = vrot.slane %v233_v6, %v2595_v34 }
  0x80   :  { %v299_v18 = vrot.slane %v289_v4, %v2595_v34  ;;  %v306_v19 = vrot.slane %v2328_v5, %v2595_v34  ;;  %v114_v20 = vcombine.high %v54_v8, %v54_v8  ;;  %v121_v21 = vrot.slane %v54_v8, %v2595_v34 }
  0x81   :  { %v242_v22 = vcombine.high %v240_v15, %v240_v15  ;;  %v256_v23 = vrot.slane %v240_v15, %v2595_v34  ;;  %v263_v25 = vrot.slane %v241_v16, %v2595_v34  ;;  %v271_v26 = vcombine.high %v249_v17, %v249_v17 }
  0x82   :  { %v411_v27 = vrot.slane %v2632_v9, %v2595_v34  ;;  %v436_v28 = vcombine.low %v225_v12, %v249_v17  ;;  %v128_v29 = vrot.slane %v114_v20, %v2595_v34  ;;  %v129_v30 = vcombine.high %v121_v21, %v121_v21 }
  0x83   :  { %v270_v33 = vrot.slane %v242_v22, %v2595_v34  ;;  %v272_v35 = vcombine.high %v256_v23, %v256_v23  ;;  %v273_v36 = vcombine.high %v263_v25, %v263_v25  ;;  %v437_v37 = vcombine.low %v263_v25, %v271_v26 }
  0x84   :  { %v313_v38 = vrot.slane %v291_v11, %v2595_v34  ;;  %v130_v39 = vcombine.high %v128_v29, %v128_v29  ;;  %v137_v40 = vrot.slane %v121_v21, %v2595_v34  ;;  %v151_v41 = vrot.slane %v129_v30, %v2595_v34 }
  0x85   :  { %v320_v42 = vrot.slane %v2329_v14, %v2595_v34  ;;  %v438_v43 = vcombine.low %v273_v36, %v256_v23  ;;  %v144_v44 = vrot.slane %v128_v29, %v2595_v34  ;;  %v55_v45 = vsel %vm52_vm0, %v18_v32, %v39_v31 }
  0x86   :  { %v158_v46 = vrot.slane %v130_v39, %v2595_v34  ;;  %v338_v47 = vcombine.low %v137_v40, %v151_v41  ;;  %v2330_v49 = vcombine.high %v137_v40, %v151_v41  ;;  %v169_v50 = vrot.slane %v55_v45, %v2595_v34 }
  0x87   :  { %v439_v53 = vcombine.low %v270_v33, %v272_v35  ;;  %v446_v54 = vrot.slane %v436_v28, %v2595_v34  ;;  %v453_v55 = vrot.slane %v437_v37, %v2595_v34  ;;  %v460_v56 = vrot.slane %v438_v43, %v2595_v34  ;;  %v2436_v37 = vld [vmem:[%s3270_s2 + $0x10] sm:$0xff]  }
  0x88   :  { %v340_v57 = vcombine.low %v144_v44, %v158_v46  ;;  %v2331_v58 = vcombine.high %v144_v44, %v158_v46  ;;  %v348_v59 = vrot.slane %v338_v47, %v2595_v34  ;;  %v355_v60 = vrot.slane %v2330_v49, %v2595_v34  ;;  %2382 = vmatpush3.bf16.msra.mxu1 %v2436_v37 }
  0x89   :  { %v176_v61 = vrot.slane %v169_v50, %v2595_v34  ;;  %v58_v62 = vsel %vm52_vm0, %v21_v52, %v45_v51  ;;  %v321_v63 = vcombine.low %v299_v18, %v306_v19  ;;  %v322_v0 = vcombine.low %v313_v38, %v320_v42  ;;  %2383 = vmatprep.subr.bf16.mxu1 %v2481_v24  ;;  %v2437_v38 = vld [vmem:[%s3270_s2 + $0x8] sm:$0xff]  }
  0x8a   :  { %v362_v1 = vrot.slane %v340_v57, %v2595_v34  ;;  %v369_v2 = vrot.slane %v2331_v58, %v2595_v34  ;;  %v370_v3 = vcombine.low %v348_v59, %v355_v60  ;;  %v418_v4 = vrot.slane %v2634_v10, %v2595_v34 }
  0x8b   :  { %v404_v5 = vrot.slane %v2629_v7, %v2595_v34  ;;  %v387_v6 = vcombine.low %v176_v61, %v2612_v48  ;;  %v467_v8 = vrot.slane %v439_v53, %v2595_v34  ;;  %v336_v9 = vrot.slane %v322_v0, %v2595_v34 }
  0x8c   :  { %v371_v11 = vcombine.low %v362_v1, %v369_v2  ;;  %v281_v14 = vrot.slane %v58_v62, %v2595_v34  ;;  %v329_v15 = vrot.slane %v321_v63, %v2595_v34  ;;  %v420_v16 = vcombine.low %v411_v27, %v418_v4  ;;  %2384 = vmatpush3.bf16.msra.mxu1 %v2437_v38 }
  0x8d   :  { %v397_v12 = vrot.slane %v387_v6, %v2595_v34  ;;  %v378_v17 = vrot.slane %v370_v3, %v2595_v34  ;;  %v468_v18 = vcombine.low %v446_v54, %v453_v55  ;;  %v469_v7 = vcombine.low %v460_v56, %v467_v8  ;;  %2385 = vmatprep.subr.bf16.mxu1 %v2481_v24 }
  0x8e   :  { %v385_v10 = vrot.slane %v371_v11, %v2595_v34  ;;  %v337_v48 = vcombine.low %v329_v15, %v336_v9  ;;  %v274_v21 = vcombine.high %v270_v33, %v270_v33  ;;  %v288_v22 = vrot.slane %v281_v14, %v2595_v34 }
  0x8f   :  { %v419_v19 = vcombine.low %v397_v12, %v404_v5  ;;  %v434_v23 = vrot.slane %v420_v16, %v2595_v34  ;;  %v476_v28 = vrot.slane %v468_v18, %v2595_v34  ;;  %v483_v27 = vrot.slane %v469_v7, %v2595_v34 }
  0x90   :  { %v386_v20 = vcombine.low %v378_v17, %v385_v10  ;;  %v485_v29 = vcombine.low %v274_v21, %v288_v22 }
  0x91   :  { %v427_v26 = vrot.slane %v419_v19, %v2595_v34  ;;  %v484_v31 = vcombine.low %v476_v28, %v483_v27 }
  0x92   :  { %v505_v25 = vpack.c.bf16 %v386_v20, %v337_v48  ;;  %v492_v33 = vrot.slane %v485_v29, %v2595_v34 }
  0x93   :  { %v435_v30 = vcombine.low %v427_v26, %v434_v23 }
  0x94   :  { %637 = vmatmul.mubr.bf16.vlgmr.msra.gmra.mxu0 %v505_v25  ;;  %v499_v35 = vrot.slane %v492_v33, %v2595_v34 }
  0x95   :  { %646 = vmatprep.mubr.bf16.mxu0 %v2480_v13  ;;  %v506_v32 = vpack.c.bf16 %v484_v31, %v435_v30 }
  0x96   :  { %v507_v36 = vpack.c.bf16 %v499_v35, %v499_v35 }
  0x9c   :  { %647 = vmatmul.mubr.bf16.gmra.mxu0 %v506_v32 }
  0x9d   :  { %656 = vmatprep.mubr.bf16.mxu0 %v2480_v13  ;;  %v2438_v13 = vld [vmem:[%s3270_s2] sm:$0xff]   ;;  %s2484_s2 = smov [#allocation2]  }
  0x9e   :  { %2386 = vmatpush3.bf16.msra.mxu1 %v2438_v13  ;;  %s2317_s29 = sshll.u32 %s2484_s2, 4  ;;  %s2318_s29 = int_to_ptr.vmem [resolvable:$true] %s2317_s29 }
  0x9f   :  { %s2457_s30 = scalar_lea.vmem %s2318_s29, 2048  ;;  %p2462_p1 = scmp.lt.s32.totalorder %s2318_s29, %s2318_s29 }
  0xa0   :  { %p2458_p0 = scmp.ne.s32.totalorder %s2318_s29, %s2457_s30  ;;  %p2463_p2 = scmp.lt.s32.totalorder %s2457_s30, %s2457_s30 }
  0xa2   :  { %p2464_p3 = por %p2463_p2, %p2462_p1 }
  0xa4   :  { %657 = vmatmul.mubr.bf16.gmra.mxu0 %v507_v36  ;;  %p2465_p4 = pnand %p2464_p3, %p2458_p0 }
 0x154   :  { %v638_v39 = vpop.f32.mrf.mxu0 }
 0x155   :  { %v665_v44 = vmul.f32 %v638_v39, %v638_v39 }
 0x156   :  { %v640_v40 = vpop.f32.mrf.mxu0 }
 0x157   :  { %v670_v42 = vmul.f32 %v640_v40, %v640_v40 }
 0x158   :  { %v642_v41 = vpop.f32.mrf.mxu0 }
 0x159   :  { %v666_v45 = vmul.f32 %v642_v41, %v642_v41  ;;  %v675_v49 = vadd.f32 %v670_v42, %v665_v44 }
 0x15a   :  { %v644_v43 = vpop.f32.mrf.mxu0 }
 0x15b   :  { %v671_v46 = vmul.f32 %v644_v43, %v644_v43 }
 0x15c   :  { %v648_v47 = vpop.f32.mrf.mxu0 }
 0x15d   :  { %v676_v50 = vadd.f32 %v671_v46, %v666_v45  ;;  %v667_v56 = vmul.f32 %v648_v47, %v648_v47 }
 0x15e   :  { %v650_v51 = vpop.f32.mrf.mxu0 }
 0x15f   :  { %v680_v52 = vpack.c.bf16 %v676_v50, %v675_v49  ;;  %v672_v54 = vmul.f32 %v650_v51, %v650_v51 }
 0x160   :  { %v652_v53 = vpop.f32.mrf.mxu0 }
 0x161   :  { %2388 = vmatmul.mubr.bf16.vlgmr.msra.gmra.mxu1 %v680_v52  ;;  %v668_v57 = vmul.f32 %v652_v53, %v652_v53  ;;  %v677_v60 = vadd.f32 %v672_v54, %v667_v56 }
 0x162   :  { %v654_v55 = vpop.f32.mrf.mxu0  ;;  %2391 = vmatprep.mubr.msk.bf16.mxu1 %vm2483_vm1, %v2481_v24 }
 0x163   :  { %v673_v58 = vmul.f32 %v654_v55, %v654_v55 }
 0x164   :  { %v658_v59 = vpop.f32.mrf.mxu0 }
 0x165   :  { %v678_v61 = vadd.f32 %v673_v58, %v668_v57  ;;  %v669_v2 = vmul.f32 %v658_v59, %v658_v59 }
 0x166   :  { %v660_v62 = vpop.f32.mrf.mxu0 }
 0x167   :  { %v674_v63 = vmul.f32 %v660_v62, %v660_v62  ;;  %v681_v0 = vpack.c.bf16 %v678_v61, %v677_v60 }
 0x168   :  { %v662_v1 = vpop.f32.mrf.mxu0 }
 0x169   :  { %2392 = vmatmul.mubr.bf16.gmra.mxu1 %v681_v0  ;;  %v679_v4 = vadd.f32 %v674_v63, %v669_v2 }
 0x16a   :  { %v663_v3 = vpop.f32.mrf.mxu0  ;;  %2395 = vmatprep.mubr.msk.bf16.mxu1 %vm2483_vm1, %v2481_v24 }
 0x16b   :  { %v682_v5 = vpack.c.bf16 %v679_v4, %v679_v4 }
 0x171   :  { %2396 = vmatmul.mubr.bf16.gmra.mxu1 %v682_v5 }
 0x221   :  { %v781_v6 = vpop.f32.mrf.mxu1 }
 0x222   :  { %v782_v8 = vadd.f32 1.0, %v781_v6 }
 0x223   :  { %v2389_v9 = vpop.f32.mrf.mxu1 }
 0x224   :  { %2439 = vlog2.f32 %v782_v8 }
 0x225   :  { %v784_v11 = vpop.f32.mrf.mxu1 }
 0x226   :  { %v785_v12 = vadd.f32 1.0, %v784_v11 }
 0x227   :  { %v2390_v14 = vpop.f32.mrf.mxu1 }
 0x228   :  { %2441 = vlog2.f32 %v785_v12 }
 0x229   :  { %v789_v15 = vpop.f32.mrf.mxu1 }
 0x22a   :  { %v790_v16 = vadd.f32 1.0, %v789_v15 }
 0x22b   :  { %v2393_v17 = vpop.f32.mrf.mxu1 }
 0x22c   :  { %2443 = vlog2.f32 %v790_v16 }
 0x22d   :  { %v792_v10 = vpop.f32.mrf.mxu1 }
 0x22e   :  { %v793_v48 = vadd.f32 1.0, %v792_v10 }
 0x22f   :  { %v2394_v18 = vpop.f32.mrf.mxu1 }
 0x230   :  { %2445 = vlog2.f32 %v793_v48 }
 0x231   :  { %v2440_v7 = vpop.eup %2439  ;;  %v797_v19 = vpop.f32.mrf.mxu1 }
 0x232   :  { %v804_v24 = vmul.f32 0.6931472, %v2440_v7  ;;  %v798_v20 = vadd.f32 1.0, %v797_v19 }
 0x233   :  { %v2397_v21 = vpop.f32.mrf.mxu1 }
 0x234   :  { %v818_v22 = vcombine.high %v804_v24, %v804_v24  ;;  %v825_v23 = vrot.slane %v804_v24, %v2595_v34  ;;  %2447 = vlog2.f32 %v798_v20 }
 0x235   :  { %v2442_v25 = vpop.eup %2441  ;;  %v800_v26 = vpop.f32.mrf.mxu1 }
 0x236   :  { %v832_v28 = vrot.slane %v818_v22, %v2595_v34  ;;  %v833_v27 = vcombine.high %v825_v23, %v825_v23  ;;  %v806_v29 = vmul.f32 0.6931472, %v2442_v25  ;;  %v2711_v32 = vrot.slane %v825_v23, %v2595_v34 }
 0x237   :  { %v2398_v30 = vpop.f32.mrf.mxu1 }
 0x238   :  { %v834_v31 = vcombine.high %v832_v28, %v832_v28  ;;  %v2714_v33 = vrot.slane %v833_v27, %v2595_v34  ;;  %v867_v35 = vcombine.high %v806_v29, %v806_v29  ;;  %v2717_v37 = vrot.slane %v832_v28, %v2595_v34 }
 0x239   :  { %v2444_v36 = vpop.eup %2443  ;;  %v874_v38 = vrot.slane %v806_v29, %v2595_v34 }
 0x23a   :  { %v2721_v13 = vrot.slane %v834_v31, %v2595_v34  ;;  %v1070_v39 = vcombine.low %v2711_v32, %v2714_v33  ;;  %v2356_v40 = vcombine.high %v2711_v32, %v2714_v33  ;;  %v881_v41 = vrot.slane %v867_v35, %v2595_v34 }
 0x23b   :  { %v882_v42 = vcombine.high %v874_v38, %v874_v38  ;;  %v808_v43 = vmul.f32 0.6931472, %v2444_v36  ;;  %v2735_v50 = vrot.slane %v874_v38, %v2595_v34 }
 0x23c   :  { %v1072_v44 = vcombine.low %v2717_v37, %v2721_v13  ;;  %v2357_v45 = vcombine.high %v2717_v37, %v2721_v13  ;;  %v1080_v46 = vrot.slane %v1070_v39, %v2595_v34  ;;  %v1087_v47 = vrot.slane %v2356_v40, %v2595_v34 }
 0x23d   :  { %v883_v49 = vcombine.high %v881_v41, %v881_v41  ;;  %v2738_v51 = vrot.slane %v882_v42, %v2595_v34  ;;  %v916_v54 = vcombine.high %v808_v43, %v808_v43  ;;  %v2743_v55 = vrot.slane %v881_v41, %v2595_v34  ;;  %v2446_v6 = vpop.eup %2445 }
 0x23e   :  { %v1094_v52 = vrot.slane %v1072_v44, %v2595_v34  ;;  %v1101_v53 = vrot.slane %v2357_v45, %v2595_v34  ;;  %v1102_v58 = vcombine.low %v1080_v46, %v1087_v47  ;;  %v923_v61 = vrot.slane %v808_v43, %v2595_v34 }
 0x23f   :  { %v2746_v56 = vrot.slane %v883_v49, %v2595_v34  ;;  %v1119_v57 = vcombine.low %v2735_v50, %v2738_v51  ;;  %v2358_v60 = vcombine.high %v2735_v50, %v2738_v51  ;;  %v930_v1 = vrot.slane %v916_v54, %v2595_v34 }
 0x240   :  { %v1103_v59 = vcombine.low %v1094_v52, %v1101_v53  ;;  %v931_v4 = vcombine.high %v923_v61, %v923_v61  ;;  %v2762_v5 = vrot.slane %v923_v61, %v2595_v34  ;;  %v1110_v14 = vrot.slane %v1102_v58, %v2595_v34 }
 0x241   :  { %v1121_v62 = vcombine.low %v2743_v55, %v2746_v56  ;;  %v2359_v63 = vcombine.high %v2743_v55, %v2746_v56  ;;  %v1129_v0 = vrot.slane %v1119_v57, %v2595_v34  ;;  %v1136_v3 = vrot.slane %v2358_v60, %v2595_v34  ;;  %v2448_v12 = vpop.eup %2447 }
 0x242   :  { %v1117_v2 = vrot.slane %v1103_v59, %v2595_v34  ;;  %v932_v11 = vcombine.high %v930_v1, %v930_v1  ;;  %v2768_v16 = vrot.slane %v930_v1, %v2595_v34  ;;  %v2771_v17 = vrot.slane %v931_v4, %v2595_v34 }
 0x243   :  { %v1143_v8 = vrot.slane %v1121_v62, %v2595_v34  ;;  %v1150_v9 = vrot.slane %v2359_v63, %v2595_v34  ;;  %v1151_v15 = vcombine.low %v1129_v0, %v1136_v3  ;;  %v1174_v18 = vrot.slane %v2762_v5, %v2595_v34 }
 0x244   :  { %v2776_v7 = vrot.slane %v932_v11, %v2595_v34  ;;  %v2780_v19 = vcombine.high %v2771_v17, %v2771_v17  ;;  %v1118_v24 = vcombine.low %v1110_v14, %v1117_v2  ;;  %v810_v21 = vmul.f32 0.6931472, %v2446_v6 }
 0x245   :  { %v1152_v10 = vcombine.low %v1143_v8, %v1150_v9  ;;  %v1159_v48 = vrot.slane %v1151_v15, %v2595_v34  ;;  %v2786_v22 = vcombine.high %v2762_v5, %v2762_v5  ;;  %v2790_v23 = vcombine.high %v2768_v16, %v2768_v16 }
 0x246   :  { %v1181_v25 = vrot.slane %v1174_v18, %v2595_v34  ;;  %v812_v26 = vmul.f32 0.6931472, %v2448_v12  ;;  %v965_v27 = vcombine.high %v810_v21, %v810_v21  ;;  %v972_v29 = vrot.slane %v810_v21, %v2595_v34 }
 0x247   :  { %v1166_v20 = vrot.slane %v1152_v10, %v2595_v34  ;;  %v1183_v30 = vcombine.low %v2780_v19, %v2768_v16  ;;  %v1300_v31 = vsel %vm52_vm0, %v1118_v24, 0.0  ;;  %v2799_v35 = vcombine.high %v2776_v7, %v2776_v7 }
 0x248   :  { %v1020_v36 = vrot.slane %v812_v26, %v2595_v34  ;;  %v979_v39 = vrot.slane %v965_v27, %v2595_v34  ;;  %v980_v40 = vcombine.high %v972_v29, %v972_v29  ;;  %v2805_v41 = vrot.slane %v972_v29, %v2595_v34 }
 0x249   :  { %v1167_v28 = vcombine.low %v1159_v48, %v1166_v20  ;;  %v1182_v42 = vcombine.low %v2771_v17, %v2786_v22  ;;  %v1184_v43 = vcombine.low %v2776_v7, %v2790_v23  ;;  %v1304_v45 = vsel %vm1303_vm2, %v1181_v25, 0.0 }
 0x24a   :  { %v981_v46 = vcombine.high %v979_v39, %v979_v39  ;;  %v2813_v47 = vrot.slane %v979_v39, %v2595_v34  ;;  %v2816_v49 = vrot.slane %v980_v40, %v2595_v34  ;;  %v2820_v52 = vcombine.high %v2805_v41, %v2805_v41 }
 0x24b   :  { %v1301_v38 = vsel %vm52_vm0, %v1167_v28, 0.0  ;;  %v1199_v53 = vrot.slane %v1183_v30, %v2595_v34  ;;  %v1185_v57 = vcombine.low %v2799_v35, %v2805_v41  ;;  %v1021_v58 = vcombine.high %v1020_v36, %v1020_v36 }
 0x24c   :  { %v1302_v44 = vadd.f32 %v1301_v38, %v1300_v31  ;;  %v2826_v59 = vrot.slane %v981_v46, %v2595_v34  ;;  %v2830_v60 = vcombine.high %v2813_v47, %v2813_v47  ;;  %v2834_v61 = vcombine.high %v2816_v49, %v2816_v49 }
 0x24d   :  { %v1231_v62 = vcombine.low %v2816_v49, %v2820_v52  ;;  %v1192_v63 = vrot.slane %v1182_v42, %v2595_v34  ;;  %v1206_v1 = vrot.slane %v1184_v43, %v2595_v34  ;;  %v1213_v2 = vrot.slane %v1185_v57, %v2595_v34 }
 0x24e   :  { %v1305_v54 = vadd.f32 %v1304_v45, %v1302_v44  ;;  %v1232_v3 = vcombine.low %v2834_v61, %v2813_v47  ;;  %v1233_v4 = vcombine.low %v2826_v59, %v2830_v60  ;;  %v2847_v6 = vcombine.high %v2826_v59, %v2826_v59 }
 0x24f   :  { %v2850_v8 = vrot.slane %v1020_v36, %v2595_v34  ;;  %v1214_v9 = vcombine.low %v1192_v63, %v1199_v53  ;;  %v1215_v12 = vcombine.low %v1206_v1, %v1213_v2  ;;  %v1241_v14 = vrot.slane %v1231_v62, %v2595_v34 }
 0x250   :  { %v1306_v0 = vrot.slane %v1305_v54, 4  ;;  %v1248_v15 = vrot.slane %v1232_v3, %v2595_v34  ;;  %v2855_v10 = vrot.slane %v1021_v58, %v2595_v34  ;;  %v1255_v21 = vrot.slane %v1233_v4, %v2595_v34 }
 0x251   :  { %v1234_v18 = vcombine.low %v2847_v6, %v2850_v8  ;;  %v1229_v48 = vrot.slane %v1215_v12, %v2595_v34  ;;  %v1222_v28 = vrot.slane %v1214_v9, %v2595_v34  ;;  %v912_v1 = vcombine.high %v2735_v50, %v2735_v50 }
 0x252   :  { %v1307_v11 = vadd.f32 %v1306_v0, %v1305_v54  ;;  %v1263_v20 = vcombine.low %v1241_v14, %v1248_v15  ;;  %v1286_v29 = vrot.slane %v2855_v10, %v2595_v34  ;;  %v863_v2 = vcombine.high %v2711_v32, %v2711_v32 }
 0x253   :  { %v1262_v25 = vrot.slane %v1234_v18, %v2595_v34  ;;  %v1230_v31 = vcombine.low %v1222_v28, %v1229_v48  ;;  %v864_v3 = vcombine.high %v2717_v37, %v2717_v37  ;;  %v913_v4 = vcombine.high %v2743_v55, %v2743_v55 }
 0x254   :  { %v1308_v24 = vrot.slane %v1307_v11, 2  ;;  %v1271_v36 = vrot.slane %v1263_v20, %v2595_v34  ;;  %v1293_v42 = vrot.slane %v1286_v29, %v2595_v34  ;;  %v914_v48 = vcombine.high %v2738_v51, %v2738_v51 }
 0x255   :  { %v1264_v27 = vcombine.low %v1255_v21, %v1262_v25  ;;  %v1312_v44 = vsel %vm52_vm0, %v1230_v31, 0.0  ;;  %v865_v21 = vcombine.high %v2714_v33, %v2714_v33  ;;  %v866_v25 = vcombine.high %v2721_v13, %v2721_v13 }
 0x256   :  { %v1309_v26 = vadd.f32 %v1308_v24, %v1307_v11  ;;  %v1315_v57 = vsel %vm1303_vm2, %v1293_v42, 0.0 }
 0x257   :  { %v1278_v38 = vrot.slane %v1264_v27, %v2595_v34 }
 0x258   :  { %v1310_v30 = vrot.slane %v1309_v26, 1 }
 0x259   :  { %v1279_v40 = vcombine.low %v1271_v36, %v1278_v38 }
 0x25a   :  { %v1311_v39 = vadd.f32 %v1310_v30, %v1309_v26 }
 0x25b   :  { %v1313_v45 = vsel %vm52_vm0, %v1279_v40, 0.0 }
 0x25c   :  { %v1323_v43 = vmul.f32 0.05882353, %v1311_v39  ;;  %v1314_v53 = vadd.f32 %v1313_v45, %v1312_v44 }
 0x25e   :  { %v1334_v46 = vrot.slane %v1323_v43, %v2595_v34  ;;  %v1327_v54 = vcombine.high %v1323_v43, %v1323_v43  ;;  %v1316_v62 = vadd.f32 %v1315_v57, %v1314_v53 }
 0x260   :  { %v1350_v58 = vrot.slane %v1334_v46, %v2595_v34  ;;  %v1341_v63 = vrot.slane %v1327_v54, %v2595_v34  ;;  %v1342_v0 = vcombine.high %v1334_v46, %v1334_v46  ;;  %v1317_v11 = vrot.slane %v1316_v62, 4 }
 0x262   :  { %v2883_v9 = vsub.f32 %v2762_v5, %v1350_v58  ;;  %v1343_v12 = vcombine.high %v1341_v63, %v1341_v63  ;;  %v2886_v14 = vsub.f32 %v2735_v50, %v1350_v58  ;;  %v1357_v15 = vrot.slane %v1341_v63, %v2595_v34 }
 0x263   :  { %v1364_v18 = vrot.slane %v1342_v0, %v2595_v34  ;;  %v1372_v24 = vcombine.high %v1350_v58, %v1350_v58  ;;  %v1318_v20 = vadd.f32 %v1317_v11, %v1316_v62  ;;  %v915_v50 = vcombine.high %v2746_v56, %v2746_v56 }
 0x264   :  { %v1371_v5 = vrot.slane %v1343_v12, %v2595_v34  ;;  %v1373_v26 = vcombine.high %v1357_v15, %v1357_v15  ;;  %v2901_v27 = vmul.f32 %v2883_v9, %v2883_v9  ;;  %v2904_v31 = vsub.f32 %v2711_v32, %v1350_v58 }
 0x265   :  { %v1374_v28 = vcombine.high %v1364_v18, %v1364_v18  ;;  %v1319_v29 = vrot.slane %v1318_v20, 2  ;;  %v2907_v36 = vsub.f32 %v2714_v33, %v1364_v18  ;;  %v2909_v38 = vsub.f32 %v863_v2, %v1372_v24 }
 0x266   :  { %v1375_v30 = vcombine.high %v1371_v5, %v1371_v5  ;;  %v1483_v40 = vmul.f32 %v2886_v14, %v2886_v14  ;;  %v2916_v43 = vsub.f32 %v2717_v37, %v1357_v15  ;;  %v2919_v44 = vsub.f32 %v2721_v13, %v1371_v5 }
 0x267   :  { %v2911_v39 = vsub.f32 %v865_v21, %v1374_v28  ;;  %v1320_v42 = vadd.f32 %v1319_v29, %v1318_v20  ;;  %v2923_v32 = vsub.f32 %v864_v3, %v1373_v26  ;;  %v2926_v33 = vsub.f32 %v2738_v51, %v1364_v18 }
 0x268   :  { %v2921_v45 = vsub.f32 %v866_v25, %v1375_v30  ;;  %v2928_v46 = vsub.f32 %v912_v1, %v1372_v24  ;;  %v2930_v53 = vsub.f32 %v914_v48, %v1374_v28  ;;  %v2933_v57 = vsub.f32 %v2743_v55, %v1357_v15 }
 0x269   :  { %v1321_v54 = vrot.slane %v1320_v42, 1  ;;  %v2936_v37 = vsub.f32 %v2746_v56, %v1371_v5  ;;  %v2938_v13 = vsub.f32 %v913_v4, %v1373_v26  ;;  %v2940_v58 = vsub.f32 %v915_v50, %v1375_v30 }
 0x26a   :  { %v1475_v62 = vmul.f32 %v2904_v31, %v2904_v31  ;;  %v1476_v51 = vmul.f32 %v2907_v36, %v2907_v36  ;;  %v1478_v63 = vmul.f32 %v2911_v39, %v2911_v39  ;;  %v1477_v55 = vmul.f32 %v2909_v38, %v2909_v38 }
 0x26b   :  { %v1322_v0 = vadd.f32 %v1321_v54, %v1320_v42  ;;  %v1480_v56 = vmul.f32 %v2919_v44, %v2919_v44  ;;  %v1482_v1 = vmul.f32 %v2921_v45, %v2921_v45  ;;  %v1479_v2 = vmul.f32 %v2916_v43, %v2916_v43 }
 0x26c   :  { %v1481_v3 = vmul.f32 %v2923_v32, %v2923_v32  ;;  %v1484_v4 = vmul.f32 %v2926_v33, %v2926_v33  ;;  %v2962_v11 = vmul.f32 %v2928_v46, %v2928_v46  ;;  %v2966_v15 = vmul.f32 %v2930_v53, %v2930_v53 }
 0x26d   :  { %v1324_v12 = vmul.f32 0.05882353, %v1322_v0  ;;  %v2970_v18 = vmul.f32 %v2933_v57, %v2933_v57  ;;  %v2974_v24 = vmul.f32 %v2936_v37, %v2936_v37  ;;  %v1543_v48 = vcombine.low %v1475_v62, %v1476_v51 }
 0x26e   :  { %v1544_v20 = vcombine.low %v1477_v55, %v1478_v63  ;;  %v1545_v21 = vcombine.low %v1479_v2, %v1480_v56  ;;  %v1546_v5 = vcombine.low %v1481_v3, %v1482_v1  ;;  %v2979_v26 = vmul.f32 %v2940_v58, %v2940_v58 }
 0x26f   :  { %v1376_v25 = vcombine.high %v1324_v12, %v1324_v12  ;;  %v1383_v50 = vrot.slane %v1324_v12, %v2595_v34  ;;  %v1592_v28 = vcombine.low %v1483_v40, %v1484_v4  ;;  %v2982_v29 = vrot.slane %v1543_v48, %v2595_v34 }
 0x270   :  { %v2985_v30 = vrot.slane %v1544_v20, %v2595_v34  ;;  %v2988_v42 = vrot.slane %v1545_v21, %v2595_v34  ;;  %v2991_v54 = vrot.slane %v1546_v5, %v2595_v34  ;;  %v2997_v40 = vmul.f32 %v2938_v13, %v2938_v13 }
 0x271   :  { %v1390_v62 = vrot.slane %v1376_v25, %v2595_v34  ;;  %v1391_v51 = vcombine.high %v1383_v50, %v1383_v50  ;;  %v1399_v63 = vrot.slane %v1383_v50, %v2595_v34  ;;  %v3018_v5 = vrot.slane %v1592_v28, %v2595_v34 }
 0x273   :  { %v1392_v2 = vcombine.high %v1390_v62, %v1390_v62  ;;  %v1406_v3 = vrot.slane %v1390_v62, %v2595_v34  ;;  %v1413_v4 = vrot.slane %v1391_v51, %v2595_v34  ;;  %v1421_v12 = vcombine.high %v1399_v63, %v1399_v63 }
 0x274   :  { %v3010_v48 = vsub.f32 %v2771_v17, %v1399_v63  ;;  %v3013_v20 = vsub.f32 %v2816_v49, %v1399_v63  ;;  %v3034_v21 = vsub.f32 %v2855_v10, %v1399_v63 }
 0x275   :  { %v1420_v25 = vrot.slane %v1392_v2, %v2595_v34  ;;  %v1422_v50 = vcombine.high %v1406_v3, %v1406_v3  ;;  %v1423_v1 = vcombine.high %v1413_v4, %v1413_v4  ;;  %v3022_v62 = vsub.f32 %v2786_v22, %v1413_v4 }
 0x276   :  { %3284 = vst [vmem:[#allocation5_spill] sm:$0xff] %v3013_v20  ;;  %v3025_v51 = vsub.f32 %v2780_v19, %v1421_v12  ;;  %v3028_v17 = vsub.f32 %v2776_v7, %v1406_v3  ;;  %v3031_v49 = vsub.f32 %v2820_v52, %v1413_v4  ;;  %v3046_v19 = vsub.f32 %v2834_v61, %v1421_v12 }
 0x277   :  { %v1424_v28 = vcombine.high %v1420_v25, %v1420_v25  ;;  %v3037_v2 = vsub.f32 %v2768_v16, %v1423_v1  ;;  %v3040_v0 = vsub.f32 %v2790_v23, %v1420_v25  ;;  %v3043_v22 = vsub.f32 %v2799_v35, %v1422_v50 }
 0x278   :  { %3285 = vst [vmem:[#allocation6_spill] sm:$0xff] %v3025_v51  ;;  %3286 = vst [vmem:[#allocation7_spill] sm:$0xff] %v3028_v17  ;;  %v3049_v7 = vsub.f32 %v2813_v47, %v1423_v1  ;;  %v3052_v52 = vsub.f32 %v2826_v59, %v1406_v3  ;;  %v3055_v10 = vsub.f32 %v2830_v60, %v1420_v25 }
 0x279   :  { %3287 = vst [vmem:[#allocation8_spill] sm:$0xff] %v3031_v49  ;;  %3288 = vst [vmem:[#allocation9_spill] sm:$0xff] %v3040_v0  ;;  %v3058_v16 = vsub.f32 %v2805_v41, %v1424_v28  ;;  %v3061_v23 = vsub.f32 %v2847_v6, %v1422_v50  ;;  %v3064_v35 = vsub.f32 %v2850_v8, %v1424_v28 }
 0x27a   :  { %3289 = vst [vmem:[#allocation10_spill] sm:$0xff] %v3043_v22  ;;  %3290 = vst [vmem:[#allocation11_spill] sm:$0xff] %v3046_v19  ;;  %v1493_v61 = vmul.f32 %v3022_v62, %v3022_v62  ;;  %v1492_v47 = vmul.f32 %v3010_v48, %v3010_v48  ;;  %v1494_v59 = vmul.f32 %v3025_v51, %v3025_v51 }
 0x27b   :  { %3291 = vst [vmem:[#allocation12_spill] sm:$0xff] %v3049_v7  ;;  %3292 = vst [vmem:[#allocation13_spill] sm:$0xff] %v3052_v52  ;;  %v1495_v60 = vmul.f32 %v3037_v2, %v3037_v2  ;;  %v1497_v41 = vmul.f32 %v3040_v0, %v3040_v0  ;;  %v1496_v6 = vmul.f32 %v3028_v17, %v3028_v17 }
 0x27c   :  { %3293 = vst [vmem:[#allocation14_spill] sm:$0xff] %v3055_v10  ;;  %3294 = vst [vmem:[#allocation15_spill] sm:$0xff] %v3058_v16  ;;  %v1498_v8 = vmul.f32 %v3043_v22, %v3043_v22  ;;  %v1499_v63 = vmul.f32 %v3058_v16, %v3058_v16  ;;  %v1501_v1 = vmul.f32 %v3031_v49, %v3031_v49 }
 0x27d   :  { %3295 = vst [vmem:[#allocation16_spill] sm:$0xff] %v3061_v23  ;;  %v1500_v3 = vmul.f32 %v3013_v20, %v3013_v20  ;;  %v1502_v4 = vmul.f32 %v3046_v19, %v3046_v19  ;;  %v1503_v12 = vmul.f32 %v3049_v7, %v3049_v7  ;;  %v1505_v25 = vmul.f32 %v3055_v10, %v3055_v10 }
 0x27e   :  { %v1504_v50 = vmul.f32 %v3052_v52, %v3052_v52  ;;  %v1506_v28 = vmul.f32 %v3061_v23, %v3061_v23  ;;  %v1507_v56 = vmul.f32 %v3064_v35, %v3064_v35  ;;  %v1655_v55 = vcombine.low %v1492_v47, %v1493_v61 }
 0x27f   :  { %v1656_v49 = vcombine.low %v1494_v59, %v1495_v60  ;;  %v1657_v20 = vcombine.low %v1496_v6, %v1497_v41  ;;  %v1658_v16 = vcombine.low %v1498_v8, %v1499_v63  ;;  %v1704_v19 = vcombine.low %v1500_v3, %v1501_v1 }
 0x280   :  { %v1508_v7 = vmul.f32 %v3034_v21, %v3034_v21  ;;  %v1705_v22 = vcombine.low %v1502_v4, %v1503_v12  ;;  %v1706_v0 = vcombine.low %v1504_v50, %v1505_v25  ;;  %v1707_v10 = vcombine.low %v1506_v28, %v1507_v56 }
 0x281   :  { %v1665_v17 = vrot.slane %v1655_v55, %v2595_v34  ;;  %v1672_v52 = vrot.slane %v1656_v49, %v2595_v34  ;;  %v1679_v23 = vrot.slane %v1657_v20, %v2595_v34  ;;  %v1686_v51 = vrot.slane %v1658_v16, %v2595_v34 }
 0x282   :  { %v1714_v61 = vrot.slane %v1704_v19, %v2595_v34  ;;  %v1721_v47 = vrot.slane %v1705_v22, %v2595_v34  ;;  %v1728_v59 = vrot.slane %v1706_v0, %v2595_v34  ;;  %v1735_v60 = vrot.slane %v1707_v10, %v2595_v34 }
 0x283   :  { %v1687_v41 = vcombine.low %v1665_v17, %v1672_v52  ;;  %v1688_v6 = vcombine.low %v1679_v23, %v1686_v51  ;;  %v3296_v55 = vcombine.low %v2988_v42, %v2991_v54  ;;  %v3297_v20 = vcombine.low %v2962_v11, %v2966_v15 }
 0x284   :  { %v1736_v16 = vcombine.low %v1714_v61, %v1721_v47  ;;  %v1737_v19 = vcombine.low %v1728_v59, %v1735_v60  ;;  %v1759_v22 = vrot.slane %v1508_v7, %v2595_v34  ;;  %v3298_v0 = vcombine.low %v2982_v29, %v2985_v30 }
 0x285   :  { %v1590_v56 = vrot.slane %v3296_v55, %v2595_v34  ;;  %v1609_v49 = vrot.slane %v3297_v20, %v2595_v34  ;;  %v1695_v51 = vrot.slane %v1687_v41, %v2595_v34  ;;  %v1702_v52 = vrot.slane %v1688_v6, %v2595_v34 }
 0x286   :  { %v1583_v17 = vrot.slane %v3298_v0, %v2595_v34  ;;  %v3299_v42 = vcombine.low %v2970_v18, %v2974_v24  ;;  %v3300_v11 = vcombine.low %v2997_v40, %v2979_v26  ;;  %v1744_v7 = vrot.slane %v1736_v16, %v2595_v34 }
 0x287   :  { %v1751_v10 = vrot.slane %v1737_v19, %v2595_v34  ;;  %v1624_v29 = vcombine.low %v3018_v5, %v1609_v49  ;;  %v1647_v30 = vrot.slane %v2901_v27, %v2595_v34  ;;  %v1703_v23 = vcombine.low %v1695_v51, %v1702_v52 }
 0x288   :  { %v1616_v54 = vrot.slane %v3299_v42, %v2595_v34  ;;  %v1623_v15 = vrot.slane %v3300_v11, %v2595_v34  ;;  %v1591_v8 = vcombine.low %v1583_v17, %v1590_v56  ;;  %v1766_v18 = vrot.slane %v1759_v22, %v2595_v34 }
 0x289   :  { %v1752_v1 = vcombine.low %v1744_v7, %v1751_v10  ;;  %v1784_v24 = vsel %vm52_vm0, %v1703_v23, 0.0  ;;  %v1632_v26 = vrot.slane %v1624_v29, %v2595_v34  ;;  %v1654_v4 = vrot.slane %v1647_v30, %v2595_v34 }
 0x28a   :  { %v1625_v63 = vcombine.low %v1616_v54, %v1623_v15  ;;  %v1773_v27 = vsel %vm52_vm0, %v1591_v8, 0.0  ;;  %v1787_v25 = vsel %vm1303_vm2, %v1766_v18, 0.0 }
 0x28b   :  { %v1785_v3 = vsel %vm52_vm0, %v1752_v1, 0.0  ;;  %v1776_v47 = vsel %vm1303_vm2, %v1654_v4, 0.0 }
 0x28c   :  { %v1639_v40 = vrot.slane %v1625_v63, %v2595_v34  ;;  %v1786_v5 = vadd.f32 %v1785_v3, %v1784_v24 }
 0x28e   :  { %v1640_v12 = vcombine.low %v1632_v26, %v1639_v40  ;;  %v1788_v50 = vadd.f32 %v1787_v25, %v1786_v5 }
 0x290   :  { %v1774_v28 = vsel %vm52_vm0, %v1640_v12, 0.0  ;;  %v1789_v59 = vrot.slane %v1788_v50, 4 }
 0x291   :  { %v1775_v61 = vadd.f32 %v1774_v28, %v1773_v27 }
 0x292   :  { %v1790_v41 = vadd.f32 %v1789_v59, %v1788_v50 }
 0x293   :  { %v1777_v60 = vadd.f32 %v1776_v47, %v1775_v61 }
 0x294   :  { %v1791_v55 = vrot.slane %v1790_v41, 2 }
 0x295   :  { %v1778_v6 = vrot.slane %v1777_v60, 4 }
 0x296   :  { %v1792_v20 = vadd.f32 %v1791_v55, %v1790_v41 }
 0x297   :  { %v1779_v56 = vadd.f32 %v1778_v6, %v1777_v60 }
 0x298   :  { %v1793_v16 = vrot.slane %v1792_v20, 1 }
 0x299   :  { %v1780_v49 = vrot.slane %v1779_v56, 2 }
 0x29a   :  { %v1794_v22 = vadd.f32 %v1793_v16, %v1792_v20 }
 0x29b   :  { %v1781_v19 = vadd.f32 %v1780_v49, %v1779_v56 }
 0x29c   :  { %v1796_v17 = vmul.f32 0.0625, %v1794_v22 }
 0x29d   :  { %v1782_v0 = vrot.slane %v1781_v19, 1 }
 0x29e   :  { %2449 = vrsqrt.f32 %v1796_v17  ;;  %vm1806_vm3 = vcmp.eq.f32.partialorder %v1796_v17, inf  ;;  %v1809_v11 = vand.u32 2147483648, %v1796_v17  ;;  %vm1808_vm4 = vcmp.eq.f32.partialorder %v1796_v17, 0.0 }
 0x29f   :  { %v1783_v51 = vadd.f32 %v1782_v0, %v1781_v19 }
 0x2a1   :  { %v1795_v52 = vmul.f32 0.0625, %v1783_v51 }
 0x2a3   :  { %2451 = vrsqrt.f32 %v1795_v52  ;;  %vm1799_vm5 = vcmp.eq.f32.partialorder %v1795_v52, inf  ;;  %v1802_v23 = vand.u32 2147483648, %v1795_v52  ;;  %vm1801_vm6 = vcmp.eq.f32.partialorder %v1795_v52, 0.0 }
 0x2ab   :  { %v2450_v42 = vpop.eup %2449 }
 0x2ac   :  { %v1805_v54 = vmul.f32 %v2450_v42, %v1796_v17 }
 0x2ae   :  { %v1807_v7 = vsel %vm1806_vm3, %v1796_v17, %v1805_v54 }
 0x2af   :  { %v1810_v10 = vsel %vm1808_vm4, %v1809_v11, %v1807_v7 }
 0x2b0   :  { %v2452_v15 = vpop.eup %2451  ;;  %v1812_v30 = vadd.f32 1e-05, %v1810_v10 }
 0x2b1   :  { %v1798_v29 = vmul.f32 %v2452_v15, %v1795_v52 }
 0x2b2   :  { %2453 = vrcp.f32 %v1812_v30 }
 0x2b3   :  { %v1800_v8 = vsel %vm1799_vm5, %v1795_v52, %v1798_v29 }
 0x2b4   :  { %v1803_v63 = vsel %vm1801_vm6, %v1802_v23, %v1800_v8 }
 0x2b5   :  { %v1811_v1 = vadd.f32 1e-05, %v1803_v63 }
 0x2b7   :  { %2455 = vrcp.f32 %v1811_v1 }
 0x2bf   :  { %v2454_v18 = vpop.eup %2453 }
 0x2c0   :  { %v1866_v24 = vcombine.high %v2454_v18, %v2454_v18  ;;  %v1873_v26 = vrot.slane %v2454_v18, %v2595_v34 }
 0x2c2   :  { %v1880_v3 = vrot.slane %v1866_v24, %v2595_v34  ;;  %v1881_v4 = vcombine.high %v1873_v26, %v1873_v26  ;;  %v3149_v5 = vrot.slane %v1873_v26, %v2595_v34 }
 0x2c4   :  { %v2456_v40 = vpop.eup %2455  ;;  %v1882_v25 = vcombine.high %v1880_v3, %v1880_v3  ;;  %v3153_v50 = vrot.slane %v1880_v3, %v2595_v34  ;;  %v3156_v28 = vrot.slane %v1881_v4, %v2595_v34  ;;  %v3165_v41 = vcombine.high %v3149_v5, %v3149_v5 }
 0x2c5   :  { %v1817_v12 = vcombine.high %v2456_v40, %v2456_v40  ;;  %v1824_v27 = vrot.slane %v2456_v40, %v2595_v34  ;;  %v3169_v6 = vmul.f32 %v3149_v5, %v3010_v48 }
 0x2c6   :  { %v3161_v60 = vrot.slane %v1882_v25, %v2595_v34  ;;  %v3178_v22 = vcombine.high %v3153_v50, %v3153_v50  ;;  %v3182_v0 = vcombine.high %v3156_v28, %v3156_v28 }
 0x2c7   :  { %v1831_v61 = vrot.slane %v1817_v12, %v2595_v34  ;;  %v1832_v47 = vcombine.high %v1824_v27, %v1824_v27  ;;  %v1840_v59 = vrot.slane %v1824_v27, %v2595_v34 }
 0x2c8   :  { %v1914_v16 = vcombine.high %v3161_v60, %v3161_v60  ;;  %v1951_v12 = vmul.f32 %v3182_v0, %v3037_v2  ;;  %v3304_v2 = vld [vmem:[#allocation10_spill] sm:$0xff] }
 0x2c9   :  { %v1833_v55 = vcombine.high %v1831_v61, %v1831_v61  ;;  %v1847_v56 = vrot.slane %v1831_v61, %v2595_v34  ;;  %v1854_v20 = vrot.slane %v1832_v47, %v2595_v34  ;;  %v1862_v49 = vcombine.high %v1840_v59, %v1840_v59  ;;  %v3301_v61 = vld [vmem:[#allocation6_spill] sm:$0xff] }
 0x2ca   :  { %v1931_v19 = vmul.f32 %v1840_v59, %v2904_v31  ;;  %v1939_v54 = vmul.f32 %v1840_v59, %v2886_v14  ;;  %v3190_v11 = vmul.f32 %v1840_v59, %v2883_v9  ;;  %v1963_v40 = vmul.f32 %v1914_v16, %v3064_v35 }
 0x2cb   :  { %v1861_v48 = vrot.slane %v1833_v55, %v2595_v34  ;;  %v1863_v17 = vcombine.high %v1847_v56, %v1847_v56  ;;  %v1864_v51 = vcombine.high %v1854_v20, %v1854_v20  ;;  %v1932_v52 = vmul.f32 %v1854_v20, %v2907_v36 }
 0x2cc   :  { %v1933_v42 = vmul.f32 %v1862_v49, %v2909_v38  ;;  %v1940_v31 = vmul.f32 %v1854_v20, %v2926_v33  ;;  %v1935_v10 = vmul.f32 %v1847_v56, %v2916_v43  ;;  %v1941_v36 = vmul.f32 %v1862_v49, %v2928_v46  ;;  %v3303_v20 = vld [vmem:[#allocation9_spill] sm:$0xff] }
 0x2cd   :  { %v1865_v15 = vcombine.high %v1861_v48, %v1861_v48  ;;  %v1934_v7 = vmul.f32 %v1864_v51, %v2911_v39  ;;  %v1936_v29 = vmul.f32 %v1861_v48, %v2919_v44  ;;  %v1937_v30 = vmul.f32 %v1863_v17, %v2923_v32 }
 0x2ce   :  { %v1999_v23 = vcombine.low %v1931_v19, %v1932_v52  ;;  %v1942_v38 = vmul.f32 %v1864_v51, %v2930_v53  ;;  %v1944_v9 = vmul.f32 %v1861_v48, %v2936_v37  ;;  %v1943_v63 = vmul.f32 %v1847_v56, %v2933_v57  ;;  %v3302_v56 = vld [vmem:[#allocation7_spill] sm:$0xff] }
 0x2cf   :  { %v1938_v14 = vmul.f32 %v1865_v15, %v2921_v45  ;;  %v2000_v33 = vcombine.low %v1933_v42, %v1934_v7  ;;  %v2001_v8 = vcombine.low %v1935_v10, %v1936_v29  ;;  %v1945_v39 = vmul.f32 %v1863_v17, %v2938_v13  ;;  %v3305_v17 = vld [vmem:[#allocation15_spill] sm:$0xff]  ;;  %v3306_v10 = vld [vmem:[#allocation5_spill] sm:$0xff] }
 0x2d0   :  { %v1946_v43 = vmul.f32 %v1865_v15, %v2940_v58  ;;  %v2048_v44 = vcombine.low %v1939_v54, %v1940_v31  ;;  %v2009_v32 = vrot.slane %v1999_v23, %v2595_v34  ;;  %v2049_v18 = vcombine.low %v1941_v36, %v1942_v38  ;;  %v3308_v38 = vld [vmem:[#allocation11_spill] sm:$0xff] }
 0x2d1   :  { %v2002_v1 = vcombine.low %v1937_v30, %v1938_v14  ;;  %v2016_v46 = vrot.slane %v2000_v33, %v2595_v34  ;;  %v2023_v53 = vrot.slane %v2001_v8, %v2595_v34  ;;  %v2050_v45 = vcombine.low %v1943_v63, %v1944_v9  ;;  %v3307_v30 = vld [vmem:[#allocation8_spill] sm:$0xff]  ;;  %v3310_v63 = vld [vmem:[#allocation13_spill] sm:$0xff] }
 0x2d2   :  { %v2051_v24 = vcombine.low %v1945_v39, %v1946_v43  ;;  %v1949_v37 = vmul.f32 %v3156_v28, %v3022_v62  ;;  %v2058_v13 = vrot.slane %v2048_v44, %v2595_v34  ;;  %v2065_v58 = vrot.slane %v2049_v18, %v2595_v34  ;;  %v3309_v8 = vld [vmem:[#allocation12_spill] sm:$0xff]  ;;  %v3311_v43 = vld [vmem:[#allocation14_spill] sm:$0xff] }
 0x2d3   :  { %v2030_v57 = vrot.slane %v2002_v1, %v2595_v34  ;;  %v2031_v26 = vcombine.low %v2009_v32, %v2016_v46  ;;  %v2072_v3 = vrot.slane %v2050_v45, %v2595_v34  ;;  %v2103_v62 = vrot.slane %v3190_v11, %v2595_v34  ;;  %v3312_v1 = vld [vmem:[#allocation16_spill] sm:$0xff] }
 0x2d4   :  { %v2079_v4 = vrot.slane %v2051_v24, %v2595_v34  ;;  %v2080_v25 = vcombine.low %v2058_v13, %v2065_v58  ;;  %v1950_v47 = vmul.f32 %v3165_v41, %v3301_v61  ;;  %v1952_v35 = vmul.f32 %v3153_v50, %v3302_v56 }
 0x2d5   :  { %v2032_v27 = vcombine.low %v2023_v53, %v2030_v57  ;;  %v2039_v59 = vrot.slane %v2031_v26, %v2595_v34  ;;  %v1953_v49 = vmul.f32 %v3161_v60, %v3303_v20  ;;  %v1954_v48 = vmul.f32 %v3178_v22, %v3304_v2 }
 0x2d6   :  { %v2081_v55 = vcombine.low %v2072_v3, %v2079_v4  ;;  %v1955_v51 = vmul.f32 %v1914_v16, %v3305_v17  ;;  %v2111_v52 = vcombine.low %v3169_v6, %v1949_v37  ;;  %v2088_v42 = vrot.slane %v2080_v25, %v2595_v34 }
 0x2d7   :  { %v2046_v19 = vrot.slane %v2032_v27, %v2595_v34  ;;  %v2112_v31 = vcombine.low %v1950_v47, %v1951_v12  ;;  %v2113_v11 = vcombine.low %v1952_v35, %v1953_v49  ;;  %v1956_v29 = vmul.f32 %v3149_v5, %v3306_v10 }
 0x2d8   :  { %v2095_v54 = vrot.slane %v2081_v55, %v2595_v34  ;;  %v2114_v7 = vcombine.low %v1954_v48, %v1955_v51  ;;  %v1957_v23 = vmul.f32 %v3156_v28, %v3307_v30  ;;  %v2121_v36 = vrot.slane %v2111_v52, %v2595_v34 }
 0x2d9   :  { %v2047_v15 = vcombine.low %v2039_v59, %v2046_v19  ;;  %v2128_v16 = vrot.slane %v2112_v31, %v2595_v34  ;;  %v2135_v6 = vrot.slane %v2113_v11, %v2595_v34  ;;  %v1958_v14 = vmul.f32 %v3165_v41, %v3308_v38 }
 0x2da   :  { %v2142_v33 = vrot.slane %v2114_v7, %v2595_v34  ;;  %v1959_v9 = vmul.f32 %v3182_v0, %v3309_v8  ;;  %v1960_v39 = vmul.f32 %v3153_v50, %v3310_v63  ;;  %v1961_v28 = vmul.f32 %v3161_v60, %v3311_v43 }
 0x2db   :  { %2232 = vxpose.xlu0.b32.start [1/3] (short) (narrow) %v2047_v15, 64  ;;  %v2143_v44 = vcombine.low %v2121_v36, %v2128_v16  ;;  %v1962_v32 = vmul.f32 %v3178_v22, %v3312_v1  ;;  %v2160_v46 = vcombine.low %v1956_v29, %v1957_v23  ;;  %v2096_v18 = vcombine.low %v2088_v42, %v2095_v54 }
 0x2dc   :  { %v2144_v53 = vcombine.low %v2135_v6, %v2142_v33  ;;  %v2161_v41 = vcombine.low %v1958_v14, %v1959_v9  ;;  %v2162_v45 = vcombine.low %v1960_v39, %v1961_v28  ;;  %v2110_v24 = vrot.slane %v2103_v62, %v2595_v34 }
 0x2dd   :  { %v2163_v37 = vcombine.low %v1962_v32, %v1963_v40  ;;  %v1964_v0 = vmul.f32 %v3149_v5, %v3034_v21  ;;  %v2151_v50 = vrot.slane %v2143_v44, %v2595_v34  ;;  %v2170_v57 = vrot.slane %v2160_v46, %v2595_v34 }
 0x2de   :  { %v2158_v60 = vrot.slane %v2144_v53, %v2595_v34  ;;  %v2177_v22 = vrot.slane %v2161_v41, %v2595_v34  ;;  %v2184_v26 = vrot.slane %v2162_v45, %v2595_v34  ;;  %v2230_v40 = vsel %vm2229_vm7, %v2110_v24, 0.0 }
 0x2df   :  { %2233 = vxpose.xlu0.b32.cont [2/3] (short) (narrow) %v2096_v18, 64  ;;  %v2191_v13 = vrot.slane %v2163_v37, %v2595_v34  ;;  %v2215_v21 = vrot.slane %v1964_v0, %v2595_v34 }
 0x2e0   :  { %v2159_v58 = vcombine.low %v2151_v50, %v2158_v60  ;;  %v2192_v3 = vcombine.low %v2170_v57, %v2177_v22 }
 0x2e1   :  { %v2193_v4 = vcombine.low %v2184_v26, %v2191_v13  ;;  %v2222_v25 = vrot.slane %v2215_v21, %v2595_v34 }
 0x2e2   :  { %2264 = vxpose.xlu1.b32.start [1/3] (short) (narrow) %v2159_v58, 64  ;;  %v2200_v5 = vrot.slane %v2192_v3, %v2595_v34 }
 0x2e3   :  { %2234 = vxpose.xlu0.b32.end [3/3] (short) (narrow) %v2230_v40, 64  ;;  %v2207_v12 = vrot.slane %v2193_v4, %v2595_v34  ;;  %v2231_v62 = vsel %vm2229_vm7, %v2222_v25, 0.0 }
 0x2e5   :  { %v2208_v27 = vcombine.low %v2200_v5, %v2207_v12 }
 0x2e7   :  { %2265 = vxpose.xlu1.b32.cont [2/3] (short) (narrow) %v2208_v27, 64 }
 0x2eb   :  { %2266 = vxpose.xlu1.b32.end [3/3] (short) (narrow) %v2231_v62, 64 }
 0x357   :  { %v2248_v61 = vpop.trf.xlu0 }
 0x358   :  { %2296 = vst [vmem:[#allocation2] sm:$0xff] %v2248_v61 }
 0x35b   :  { %v2249_v47 = vpop.trf.xlu0 }
 0x35c   :  { %2297 = vst [vmem:[#allocation2 + $0x8] sm:$0xff] %v2249_v47 }
 0x35f   :  { %v2250_v59 = vpop.trf.xlu0  ;;  %v2280_v55 = vpop.trf.xlu1 }
 0x360   :  { %2298 = vst [vmem:[#allocation2 + $0x10] sm:$0xff] %v2250_v59  ;;  %2304 = vst [vmem:[#allocation2 + $0x40] sm:$0xff] %v2280_v55 }
 0x363   :  { %v2251_v56 = vpop.trf.xlu0  ;;  %v2281_v35 = vpop.trf.xlu1 }
 0x364   :  { %2299 = vst [vmem:[#allocation2 + $0x18] sm:$0xff] %v2251_v56  ;;  %2305 = vst [vmem:[#allocation2 + $0x48] sm:$0xff] %v2281_v35 }
 0x367   :  { %v2252_v20 = vpop.trf.xlu0  ;;  %v2282_v49 = vpop.trf.xlu1 }
 0x368   :  { %2300 = vst [vmem:[#allocation2 + $0x20] sm:$0xff] %v2252_v20  ;;  %2306 = vst [vmem:[#allocation2 + $0x50] sm:$0xff] %v2282_v49 }
 0x36b   :  { %v2253_v34 = vpop.trf.xlu0  ;;  %v2283_v19 = vpop.trf.xlu1 }
 0x36c   :  { %2301 = vst [vmem:[#allocation2 + $0x28] sm:$0xff] %v2253_v34  ;;  %2307 = vst [vmem:[#allocation2 + $0x58] sm:$0xff] %v2283_v19 }
 0x36f   :  { %v2254_v2 = vpop.trf.xlu0  ;;  %v2284_v48 = vpop.trf.xlu1 }
 0x370   :  { %2302 = vst [vmem:[#allocation2 + $0x30] sm:$0xff] %v2254_v2  ;;  %2308 = vst [vmem:[#allocation2 + $0x60] sm:$0xff] %v2284_v48 }
 0x373   :  { %v2255_v17 = vpop.trf.xlu0  ;;  %v2285_v51 = vpop.trf.xlu1 }
 0x374   :  { %2303 = vst [vmem:[#allocation2 + $0x38] sm:$0xff] %v2255_v17  ;;  %2309 = vst [vmem:[#allocation2 + $0x68] sm:$0xff] %v2285_v51 }
 0x377   :  { %v2286_v52 = vpop.trf.xlu1 }
 0x378   :  { %2310 = vst [vmem:[#allocation2 + $0x70] sm:$0xff] %v2286_v52 }
 0x37b   :  { %v2287_v42 = vpop.trf.xlu1 }
 0x37c   :  { %2311 = vst [vmem:[#allocation2 + $0x78] sm:$0xff] %v2287_v42 }
 0x37d   :  { %2468 = shalt.err (!%p2465_p4)
}
 0x37e   :  { %s2485_s4 = smov 128   ;;  %s2486_s5 = smov 8  }
 0x37f   :  { %2323 = dma.vmem_to_hbm [thread:$0]  %s2318_s29, 2048, %s3271_s3, [#allocation3], %s2485_s4, %s2485_s4, %s2486_s5  }
 0x380   :  { %2477 = dma.done.wait [#allocation3], 2048  }
 0x381   :  { %2478 = vsyncadd [#allocation3], 4294965248 }
 0x382   :  { %2327 = vsyncpa [#allocation3], 1 }

</bundles_post_ra>
